<compile_context>
chip_gen: v7x
topology: tpu7x:2x2x1
jax: 0.10.0
libtpu: 0.0.40
codegen_flags: <defaults>
</compile_context>

<pallas_src>
import math

import jax
import jax.numpy as jnp
from jax import lax
from jax.experimental import pallas as pl
from jax.experimental.pallas import tpu as pltpu

LN_EPS = 1e-5
LANE = 128
SUBLANE = 8


def _round_up(x, m):
    return ((x + m - 1) // m) * m


# --------------------------------------------------------------------------- kernel
def _proj_ln_kernel(x_ref, w_ref, p_ref, o_ref):
    """x_ref: (tm, K) bf16 row tile of im2col patches.
    w_ref: (K, N) bf16 reshaped conv weight (resident, single-buffered).
    p_ref: (8, N) f32; rows: 0 = conv bias, 1 = LN gamma, 2 = LN beta, rest zero.
    o_ref: (tm, N) output tile (bf16 by default).
    """
    # MXU matmul in bf16 with f32 accumulation.
    y = jnp.dot(x_ref[...], w_ref[...], preferred_element_type=jnp.float32)
    y = y + p_ref[0:1, :]

    # Two-pass (centered) LayerNorm statistics in f32 over the true embed_dim.
    inv_n = jnp.float32(1.0 / y.shape[-1])
    mean = jnp.sum(y, axis=-1, keepdims=True) * inv_n
    yc = y - mean
    var = jnp.sum(yc * yc, axis=-1, keepdims=True) * inv_n
    y_hat = yc * lax.rsqrt(var + LN_EPS)

    o_ref[...] = (y_hat * p_ref[1:2, :] + p_ref[2:3, :]).astype(o_ref.dtype)


# ------------------------------------------------------------------ tiling / VMEM policy
def _pick_tile(M, K, N, out_itemsize, target_tm, *, min_steps=8):
    """Pick the row tile and an explicit VMEM limit, per chip generation."""
    try:
        info = pltpu.get_tpu_info()
        vmem_cap = int(getattr(info, "vmem_capacity_bytes", 0)) or (64 << 20)
    except Exception:
        vmem_cap = 64 << 20  # conservative fallback (v7x physical per-TC VMEM)
    budget = int(vmem_cap * 0.45)  # headroom for Mosaic-internal scratch etc.

    # lane/sublane-padded per-buffer footprints inside VMEM
    k_t = _round_up(K, LANE)
    n_t = _round_up(N, LANE)

    def need(tm):
        return (2 * tm * k_t * 2                 # x tile, bf16, double-buffered
                + k_t * n_t * 2                  # weight, bf16, single-buffered
                + SUBLANE * n_t * 4              # packed bias/gamma/beta
                + 2 * tm * n_t * out_itemsize    # output tile, double-buffered
                + 2 * tm * n_t * 4               # f32 LN intermediates
                + (2 << 20))                     # slack

    # Largest row tile (multiple of 128) that (a) does not exceed the problem,
    # (b) keeps >= min_steps grid steps on large problems (v7x megacore / overhead
    # amortisation), (c) fits the per-generation VMEM budget.
    tm = max(LANE, min(_round_up(target_tm, LANE), _round_up(M, LANE)))
    if M > min_steps * LANE:
        tm = min(tm, max(LANE, _round_up(pl.cdiv(M, min_steps), LANE)))
    while tm > LANE and need(tm) > budget:
        tm -= LANE
    tm = min(tm, _round_up(M, SUBLANE))  # tiny problems: shrink to the real extent

    vmem_limit = int(min(vmem_cap * 0.9, max(need(tm) + (4 << 20), 16 << 20)))
    return tm, vmem_limit


def _resident_spec(shape):
    """Constant-index resident operand; single-buffered when supported."""
    try:
        return pl.BlockSpec(shape, lambda i: (0, 0), pipeline_mode=pl.Buffered(1))
    except TypeError:  # older signature without pipeline_mode
        return pl.BlockSpec(shape, lambda i: (0, 0))


# ----------------------------------------------------------------- pallas_call wrapper
def _fused_proj_layernorm(x_cols, w_kn, params, *, tm=1024, out_dtype=jnp.bfloat16):
    """x_cols: (M, K) bf16; w_kn: (K, N) bf16; params: (8, N) f32.
    Returns (M, N) = LN(x_cols @ w_kn + bias) * gamma + beta, in out_dtype."""
    M, K = x_cols.shape
    N = w_kn.shape[1]
    out_itemsize = jnp.dtype(out_dtype).itemsize

    tm_eff, vmem_limit = _pick_tile(M, K, N, out_itemsize, tm)
    grid = (pl.cdiv(M, tm_eff),)

    cost = pl.CostEstimate(
        flops=2 * M * K * N + 10 * M * N,
        transcendentals=M,
        bytes_accessed=(M * K * 2 + K * N * 2 + SUBLANE * N * 4
                        + M * N * out_itemsize),
    )

    return pl.pallas_call(
        _proj_ln_kernel,
        out_shape=jax.ShapeDtypeStruct((M, N), out_dtype),
        grid_spec=pltpu.PrefetchScalarGridSpec(
            num_scalar_prefetch=0,
            grid=grid,
            in_specs=[
                pl.BlockSpec((tm_eff, K), lambda i: (i, 0)),   # row tile of im2col
                _resident_spec((K, N)),                        # conv weight (resident)
                _resident_spec((SUBLANE, N)),                  # packed bias/gamma/beta
            ],
            out_specs=pl.BlockSpec((tm_eff, N), lambda i: (i, 0)),
        ),
        compiler_params=pltpu.CompilerParams(
            dimension_semantics=("parallel",),
            vmem_limit_bytes=vmem_limit,
        ),
        cost_estimate=cost,
    )(x_cols, w_kn, params)


def overlap_patch_embed(x_nchw, conv_w, conv_b, ln_w, ln_b, *,
                        stride, patch_size, tm=1024, out_dtype=jnp.bfloat16):
    """Forward of the overlapping conv projection + LayerNorm.

    x_nchw: (B, C_in, H, W)   conv_w: (embed_dim, C_in, kh, kw)
    conv_b, ln_w, ln_b: (embed_dim,)
    Returns (tokens (B, H_out*W_out, embed_dim), H_out, W_out).
    """
    del patch_size  # kernel extents come from conv_w
    B, C, H, W = x_nchw.shape
    embed_dim, _, kh, kw = conv_w.shape
    ph, pw = kh // 2, kw // 2

    H_out = (H + 2 * ph - kh) // stride + 1
    W_out = (W + 2 * pw - kw) // stride + 1

    # --- im2col, single materialization ---------------------------------------
    # NHWC + spatial pad once in bf16 (one cheap pass over the non-duplicated input),
    # then gather the taps directly in (b, ho, wo | i, j, c) column order so no
    # post-stack transpose and no extra pad of the duplicated tensor is needed.
    xp = jnp.pad(jnp.transpose(x_nchw, (0, 2, 3, 1)).astype(jnp.bfloat16),
                 ((0, 0), (ph, ph), (pw, pw), (0, 0)))
    taps = []
    for i in range(kh):
        for j in range(kw):
            taps.append(
                xp[:, i:i + stride * H_out:stride, j:j + stride * W_out:stride, :]
            )  # (B, H_out, W_out, C)
    x_cols = jnp.stack(taps, axis=3).reshape(B * H_out * W_out, kh * kw * C)

    # conv weight -> (kh*kw*C, embed_dim), matching the (i, j, c) column order.
    w_kn = jnp.transpose(conv_w, (2, 3, 1, 0)).reshape(kh * kw * C, embed_dim)
    w_kn = w_kn.astype(jnp.bfloat16)

    # conv bias / LN gamma / LN beta packed into one sublane-aligned f32 block.
    params = jnp.zeros((SUBLANE, embed_dim), jnp.float32)
    params = params.at[0].set(conv_b.astype(jnp.float32))
    params = params.at[1].set(ln_w.astype(jnp.float32))
    params = params.at[2].set(ln_b.astype(jnp.float32))

    # --- hot path in Pallas: bf16 MXU matmul + bias + fused f32 LayerNorm -------
    tokens = _fused_proj_layernorm(x_cols, w_kn, params, tm=tm, out_dtype=out_dtype)
    return tokens.reshape(B, H_out * W_out, embed_dim), H_out, W_out


# ----------------------------------------------------------------------- reference
def _reference(x_nchw, conv_w, conv_b, ln_w, ln_b, *, stride, patch_size):
    """f32 reference computed on the same bf16-quantized operands the kernel sees."""
    kh, kw = patch_size, patch_size
    xq = x_nchw.astype(jnp.bfloat16).astype(jnp.float32)
    wq = conv_w.astype(jnp.bfloat16).astype(jnp.float32)
    y = lax.conv_general_dilated(
        xq, wq,
        window_strides=(stride, stride),
        padding=((kh // 2, kh // 2), (kw // 2, kw // 2)),
        dimension_numbers=("NCHW", "OIHW", "NCHW"),
    ) + conv_b[None, :, None, None]
    B, E, Ho, Wo = y.shape
    t = y.reshape(B, E, Ho * Wo).transpose(0, 2, 1)
    mean = jnp.mean(t, axis=-1, keepdims=True)
    var = jnp.mean((t - mean) ** 2, axis=-1, keepdims=True)
    t = (t - mean) * lax.rsqrt(var + LN_EPS)
    return t * ln_w + ln_b, Ho, Wo


if __name__ == "__main__":
    # Small config consistent with the module: patch_size=7 > stride=4
    B, C_in, IMG = 2, 4, 16
    PATCH, STRIDE, EMBED = 7, 4, 32

    key = jax.random.PRNGKey(0)
    kx, kw_ = jax.random.split(key)

    x = jax.random.normal(kx, (B, C_in, IMG, IMG), dtype=jnp.float32)

    # Deterministic parameter init mirroring _init_weights:
    fan_out = PATCH * PATCH * EMBED
    conv_w = jax.random.normal(kw_, (EMBED, C_in, PATCH, PATCH), dtype=jnp.float32) \
             * math.sqrt(2.0 / fan_out)
    conv_b = jnp.zeros((EMBED,), jnp.float32)
    ln_w = jnp.ones((EMBED,), jnp.float32)
    ln_b = jnp.zeros((EMBED,), jnp.float32)

    tokens, H_out, W_out = overlap_patch_embed(
        x, conv_w, conv_b, ln_w, ln_b, stride=STRIDE, patch_size=PATCH)
    tokens = jax.block_until_ready(tokens)

    ref, Hr, Wr = _reference(x, conv_w, conv_b, ln_w, ln_b,
                             stride=STRIDE, patch_size=PATCH)
    assert (H_out, W_out) == (Hr, Wr) == (IMG // STRIDE, IMG // STRIDE)
    assert tokens.shape == (B, H_out * W_out, EMBED)
    # bf16 operands + bf16 output: compare against the bf16-quantized f32 reference.
    assert jnp.allclose(tokens.astype(jnp.float32), ref, atol=2.5e-2, rtol=2.5e-2)

    print("KERNEL_OK")
</pallas_src>

<mosaic_0001>
module attributes {stable_mosaic.version = 11 : i64} {
  func.func @_proj_ln_kernel(%arg0: i32, %arg1: memref<32x196xbf16, #tpu.memory_space<vmem>>, %arg2: memref<196x32xbf16, #tpu.memory_space<vmem>>, %arg3: memref<8x32xf32, #tpu.memory_space<vmem>>, %arg4: memref<32x32xbf16, #tpu.memory_space<vmem>>) attributes {dimension_semantics = [#tpu.dimension_semantics<parallel>], iteration_bounds = array<i64: 1>, scalar_prefetch = 0 : i64, scratch_operands = 0 : i64, tpu.core_type = #tpu.core_type<tc>, window_params = [{transform_indices = @transform_0, window_bounds = array<i64: 32, 196>}, {pipeline_mode = #tpu.pipeline_mode<synchronous>, transform_indices = @transform_1, window_bounds = array<i64: 196, 32>}, {pipeline_mode = #tpu.pipeline_mode<synchronous>, transform_indices = @transform_2, window_bounds = array<i64: 8, 32>}, {transform_indices = @transform_3, window_bounds = array<i64: 32, 32>}]} {
    %c0 = arith.constant 0 : index
    %c0_0 = arith.constant 0 : index
    %0 = vector.load %arg1[%c0, %c0_0] : memref<32x196xbf16, #tpu.memory_space<vmem>>, vector<32x196xbf16>
    %c0_1 = arith.constant 0 : index
    %c0_2 = arith.constant 0 : index
    %1 = vector.load %arg2[%c0_1, %c0_2] : memref<196x32xbf16, #tpu.memory_space<vmem>>, vector<196x32xbf16>
    %cst = arith.constant dense<0.000000e+00> : vector<32x32xf32>
    %2 = tpu.matmul %0, %1, %cst {dimension_numbers = #tpu.dot_dimension_numbers<[1], [0], [0], [1], [0, 0, 1, 1], [], []>} : vector<32x196xbf16>, vector<196x32xbf16>, vector<32x32xf32> -> vector<32x32xf32>
    %c0_3 = arith.constant 0 : index
    %c0_4 = arith.constant 0 : index
    %3 = vector.load %arg3[%c0_3, %c0_4] : memref<8x32xf32, #tpu.memory_space<vmem>>, vector<1x32xf32>
    %4 = vector.broadcast %3 : vector<1x32xf32> to vector<32x32xf32>
    %5 = arith.addf %2, %4 : vector<32x32xf32>
    %cst_5 = arith.constant dense<0.000000e+00> : vector<32xf32>
    %6 = vector.multi_reduction <add>, %5, %cst_5 [1] : vector<32x32xf32> to vector<32xf32>
    %7 = vector.shape_cast %6 : vector<32xf32> to vector<32x1xf32>
    %cst_6 = arith.constant 3.125000e-02 : f32
    %8 = vector.broadcast %cst_6 : f32 to vector<32x1xf32>
    %9 = arith.mulf %7, %8 : vector<32x1xf32>
    %10 = vector.broadcast %9 : vector<32x1xf32> to vector<32x32xf32>
    %11 = arith.subf %5, %10 : vector<32x32xf32>
    %12 = arith.mulf %11, %11 : vector<32x32xf32>
    %cst_7 = arith.constant dense<0.000000e+00> : vector<32xf32>
    %13 = vector.multi_reduction <add>, %12, %cst_7 [1] : vector<32x32xf32> to vector<32xf32>
    %14 = vector.shape_cast %13 : vector<32xf32> to vector<32x1xf32>
    %cst_8 = arith.constant 3.125000e-02 : f32
    %15 = vector.broadcast %cst_8 : f32 to vector<32x1xf32>
    %16 = arith.mulf %14, %15 : vector<32x1xf32>
    %cst_9 = arith.constant 9.99999974E-6 : f32
    %17 = vector.broadcast %cst_9 : f32 to vector<32x1xf32>
    %18 = arith.addf %16, %17 : vector<32x1xf32>
    %19 = math.rsqrt %18 : vector<32x1xf32>
    %20 = vector.broadcast %19 : vector<32x1xf32> to vector<32x32xf32>
    %21 = arith.mulf %11, %20 : vector<32x32xf32>
    %c1 = arith.constant 1 : index
    %c0_10 = arith.constant 0 : index
    %22 = vector.load %arg3[%c1, %c0_10] : memref<8x32xf32, #tpu.memory_space<vmem>>, vector<1x32xf32>
    %23 = vector.broadcast %22 : vector<1x32xf32> to vector<32x32xf32>
    %24 = arith.mulf %21, %23 : vector<32x32xf32>
    %c2 = arith.constant 2 : index
    %c0_11 = arith.constant 0 : index
    %25 = vector.load %arg3[%c2, %c0_11] : memref<8x32xf32, #tpu.memory_space<vmem>>, vector<1x32xf32>
    %26 = vector.broadcast %25 : vector<1x32xf32> to vector<32x32xf32>
    %27 = arith.addf %24, %26 : vector<32x32xf32>
    %28 = arith.truncf %27 : vector<32x32xf32> to vector<32x32xbf16>
    %c0_12 = arith.constant 0 : index
    %c0_13 = arith.constant 0 : index
    %29 = vector.load %arg4[%c0_12, %c0_13] : memref<32x32xbf16, #tpu.memory_space<vmem>>, vector<32x32xbf16>
    tpu.vector_store %arg4[%c0_12, %c0_13], %28 {strides = array<i32>} : memref<32x32xbf16, #tpu.memory_space<vmem>>, vector<32x32xbf16>,
    return
  }
  func.func @transform_0(%arg0: i32) -> (i32, i32) {
    %c0_i32 = arith.constant 0 : i32
    %c0_i32_0 = arith.constant 0 : i32
    return %arg0, %c0_i32 : i32, i32
  }
  func.func @transform_1(%arg0: i32) -> (i32, i32) {
    %c0_i32 = arith.constant 0 : i32
    %c0_i32_0 = arith.constant 0 : i32
    %c0_i32_1 = arith.constant 0 : i32
    return %c0_i32, %c0_i32_0 : i32, i32
  }
  func.func @transform_2(%arg0: i32) -> (i32, i32) {
    %c0_i32 = arith.constant 0 : i32
    %c0_i32_0 = arith.constant 0 : i32
    %c0_i32_1 = arith.constant 0 : i32
    return %c0_i32, %c0_i32_0 : i32, i32
  }
  func.func @transform_3(%arg0: i32) -> (i32, i32) {
    %c0_i32 = arith.constant 0 : i32
    %c0_i32_0 = arith.constant 0 : i32
    return %arg0, %c0_i32 : i32, i32
  }
}

</mosaic_0001>

<bundles_post_ra>
// kernel: tpu_custom_call.1
= control target key start
LH: loop header
LB: loop body
LE: loop exit
PB: predicated region body
PF: predicated region fallthrough
CT: control target
= control target key end

     0   :  { %v422_v1 = vmov 0   ;;  %vm143_vm0 = vcmask 556032   ;;  %s556_s0 = inlined_call_operand.vmem [shape: bf16[32,196], index: 0, kind: input, shape index: {}]   ;;  %s557_s1 = inlined_call_operand.vmem [shape: bf16[196,32], index: 1, kind: input, shape index: {}]   ;;  %s558_s2 = inlined_call_operand.vmem [shape: f32[8,32], index: 2, kind: input, shape index: {}]   ;;  %s559_s3 = inlined_call_operand.hbm [shape: bf16[32,32], index: 3, kind: output, shape index: {}]  }
   0x1   :  { %v371_v0 = vld [vmem:[%s557_s1] sm:$0xff]   ;;  %154 = vmatprep.subr.bf16.mxu0 %v422_v1  ;;  %341 = vmatprep.subr.bf16.mxu1 %v422_v1  ;;  %v372_v2 = vld [vmem:[%s557_s1 + $0x8] sm:$0xff]   ;;  %v373_v3 = vld [vmem:[%s557_s1 + $0x10] sm:$0xff]  }
   0x2   :  { %155 = vmatpush1.bf16.msra.mxu0 %v371_v0  ;;  %354 = vmatpush1.bf16.msra.mxu1 %v371_v0  ;;  %v374_v4 = vld [vmem:[%s557_s1 + $0x18] sm:$0xff]   ;;  %v386_v5 = vld [vmem:[%s556_s0 + $0x4] ss:$8 sps:$4 sm:$0xff]  }
   0x3   :  { %156 = vmatprep.subr.bf16.mxu0 %v422_v1  ;;  %342 = vmatprep.subr.bf16.mxu1 %v422_v1  ;;  %v375_v6 = vld [vmem:[%s557_s1 + $0x20] sm:$0xff]   ;;  %v389_v7 = vld [vmem:[%s556_s0 + $0x14] ss:$8 sps:$4 sm:$0xff]  }
   0x6   :  { %157 = vmatpush1.bf16.msra.mxu0 %v372_v2  ;;  %355 = vmatpush1.bf16.msra.mxu1 %v372_v2 }
   0x7   :  { %158 = vmatprep.subr.bf16.mxu0 %v422_v1  ;;  %343 = vmatprep.subr.bf16.mxu1 %v422_v1 }
   0xa   :  { %159 = vmatpush1.bf16.msra.mxu0 %v373_v3  ;;  %356 = vmatpush1.bf16.msra.mxu1 %v373_v3 }
   0xb   :  { %160 = vmatprep.subr.bf16.mxu0 %v422_v1  ;;  %344 = vmatprep.subr.bf16.mxu1 %v422_v1 }
   0xe   :  { %161 = vmatpush1.bf16.msra.mxu0 %v374_v4  ;;  %357 = vmatpush1.bf16.msra.mxu1 %v374_v4 }
   0xf   :  { %162 = vmatprep.subr.bf16.mxu0 %v422_v1  ;;  %345 = vmatprep.subr.bf16.mxu1 %v422_v1 }
  0x10   :  { %8 = vsyncpa [#allocation3], 0  ;;  %329 = vmatprep.mubr.msk.bf16.mxu0 %vm143_vm0, %v386_v5  ;;  %330 = vmatprep.mubr.msk.bf16.mxu1 %vm143_vm0, %v389_v7  ;;  %v376_v8 = vld [vmem:[%s557_s1 + $0x28] sm:$0xff]   ;;  %v377_v9 = vld [vmem:[%s557_s1 + $0x30] sm:$0xff]   ;;  %vm150_vm1 = vcmask 1041408   ;;  %vm203_vm2 = vcmask 261120  }
  0x11   :  { %v378_v10 = vld [vmem:[%s557_s1 + $0x38] sm:$0xff]   ;;  %v379_v11 = vld [vmem:[%s557_s1 + $0x40] sm:$0xff]   ;;  %v380_v12 = vld [vmem:[%s557_s1 + $0x48] sm:$0xff]   ;;  %vm290_vm3 = vcmask 257024  }
  0x12   :  { %163 = vmatpush1.bf16.msra.mxu0 %v375_v6  ;;  %358 = vmatpush1.bf16.msra.mxu1 %v375_v6  ;;  %v381_v13 = vld [vmem:[%s557_s1 + $0x50] sm:$0xff]   ;;  %v382_v14 = vld [vmem:[%s557_s1 + $0x58] sm:$0xff]   ;;  %v383_v15 = vld [vmem:[%s557_s1 + $0x60] ss:$0 sps:$4 sm:$0x33]  }
  0x13   :  { %164 = vmatprep.subr.bf16.mxu0 %v422_v1  ;;  %346 = vmatprep.subr.bf16.mxu1 %v422_v1  ;;  %v152_v16 = vsel %vm150_vm1, %v383_v15, 0  ;;  %v384_v17 = vld [vmem:[%s556_s0] ss:$8 sps:$4 sm:$0xff]   ;;  %v387_v18 = vld [vmem:[%s556_s0 + $0x10] ss:$8 sps:$4 sm:$0xff]  }
  0x14   :  { %v311_v19 = vld [vmem:[%s558_s2] ss:$0 sm:$0xff]  ;;  %v331_v5 = vld [vmem:[%s558_s2 + $0x1] ss:$0 sm:$0xff]  ;;  %v332_v7 = vld [vmem:[%s558_s2 + $0x2] ss:$0 sm:$0xff] }
  0x15   :  { %s423_s2 = smov [#allocation2]  }
  0x16   :  { %165 = vmatpush1.bf16.msra.mxu0 %v376_v8  ;;  %359 = vmatpush1.bf16.msra.mxu1 %v376_v8  ;;  %s300_s23 = sshll.u32 %s423_s2, 4  ;;  %s301_s23 = int_to_ptr.vmem [resolvable:$true] %s300_s23 }
  0x17   :  { %166 = vmatprep.subr.bf16.mxu0 %v422_v1  ;;  %347 = vmatprep.subr.bf16.mxu1 %v422_v1  ;;  %s398_s24 = scalar_lea.vmem %s301_s23, 256  ;;  %p403_p1 = scmp.lt.s32.totalorder %s301_s23, %s301_s23 }
  0x18   :  { %p399_p0 = scmp.ne.s32.totalorder %s301_s23, %s398_s24  ;;  %p404_p2 = scmp.lt.s32.totalorder %s398_s24, %s398_s24 }
  0x1a   :  { %167 = vmatpush1.bf16.msra.mxu0 %v377_v9  ;;  %360 = vmatpush1.bf16.msra.mxu1 %v377_v9  ;;  %p405_p3 = por %p404_p2, %p403_p1 }
  0x1b   :  { %168 = vmatprep.subr.bf16.mxu0 %v422_v1  ;;  %348 = vmatprep.subr.bf16.mxu1 %v422_v1 }
  0x1c   :  { %p406_p4 = pnand %p405_p3, %p399_p0 }
  0x1e   :  { %169 = vmatpush1.bf16.msra.mxu0 %v378_v10  ;;  %361 = vmatpush1.bf16.msra.mxu1 %v378_v10 }
  0x1f   :  { %170 = vmatprep.subr.bf16.mxu0 %v422_v1  ;;  %349 = vmatprep.subr.bf16.mxu1 %v422_v1 }
  0x22   :  { %171 = vmatpush1.bf16.msra.mxu0 %v379_v11  ;;  %362 = vmatpush1.bf16.msra.mxu1 %v379_v11 }
  0x23   :  { %172 = vmatprep.subr.bf16.mxu0 %v422_v1  ;;  %350 = vmatprep.subr.bf16.mxu1 %v422_v1 }
  0x26   :  { %173 = vmatpush1.bf16.msra.mxu0 %v380_v12  ;;  %363 = vmatpush1.bf16.msra.mxu1 %v380_v12 }
  0x27   :  { %174 = vmatprep.subr.bf16.mxu0 %v422_v1  ;;  %351 = vmatprep.subr.bf16.mxu1 %v422_v1 }
  0x2a   :  { %175 = vmatpush1.bf16.msra.mxu0 %v381_v13  ;;  %364 = vmatpush1.bf16.msra.mxu1 %v381_v13 }
  0x2b   :  { %176 = vmatprep.subr.bf16.mxu0 %v422_v1  ;;  %352 = vmatprep.subr.bf16.mxu1 %v422_v1 }
  0x2e   :  { %177 = vmatpush1.bf16.msra.mxu0 %v382_v14  ;;  %365 = vmatpush1.bf16.msra.mxu1 %v382_v14 }
  0x2f   :  { %178 = vmatprep.subr.bf16.mxu0 %v422_v1  ;;  %353 = vmatprep.subr.bf16.mxu1 %v422_v1 }
  0x32   :  { %179 = vmatpush1.bf16.msra.mxu0 %v152_v16  ;;  %366 = vmatpush1.bf16.msra.mxu1 %v152_v16 }
  0x35   :  { %187 = vmatmul.mubr.bf16.vlgmr.msra.gmra.mrb[0].mxu0 %v384_v17  ;;  %195 = vmatmul.mubr.bf16.vlgmr.msra.gmra.mrb[0].mxu1 %v387_v18 }
 0x108   :  { %v188_v20 = vpop.f32.mrb[0].mxu0  ;;  %v196_v21 = vpop.f32.mrb[0].mxu1 }
 0x109   :  { %v189_v22 = vadd.f32 %v311_v19, %v188_v20  ;;  %v197_v23 = vadd.f32 %v311_v19, %v196_v21  ;;  %v190_v24 = vpop.f32.mrb[1].mxu0  ;;  %v198_v25 = vpop.f32.mrb[1].mxu1 }
 0x10a   :  { %v191_v26 = vpop.f32.mrb[2].mxu0  ;;  %v199_v27 = vpop.f32.mrb[2].mxu1 }
 0x10b   :  { %v192_v28 = vadd.f32 %v311_v19, %v191_v26  ;;  %v193_v29 = vpop.f32.mrb[3].mxu0  ;;  %v200_v30 = vadd.f32 %v311_v19, %v199_v27  ;;  %v201_v31 = vpop.f32.mrb[3].mxu1  ;;  %v210_v32 = vsel %vm203_vm2, %v197_v23, 0.0  ;;  %v204_v33 = vsel %vm203_vm2, %v189_v22, 0.0 }
 0x10c   :  { %211 = vadd.xlane.f32.xlu1 %v210_v32  ;;  %205 = vadd.xlane.f32.xlu0 %v204_v33 }
 0x10d   :  { %v213_v34 = vsel %vm203_vm2, %v200_v30, 0.0  ;;  %v207_v35 = vsel %vm203_vm2, %v192_v28, 0.0 }
 0x110   :  { %214 = vadd.xlane.f32.xlu1 %v213_v34  ;;  %208 = vadd.xlane.f32.xlu0 %v207_v35 }
 0x199   :  { %v212_v36 = vpop.xlane.xlu1 %211  ;;  %v206_v37 = vpop.xlane.xlu0 %205 }
 0x19a   :  { %v218_v38 = vmul.f32 0.03125, %v212_v36  ;;  %v216_v39 = vmul.f32 0.03125, %v206_v37 }
 0x19c   :  { %v222_v40 = vsub.f32 %v197_v23, %v218_v38  ;;  %v220_v41 = vsub.f32 %v189_v22, %v216_v39 }
 0x19d   :  { %v215_v42 = vpop.xlane.xlu1 %214  ;;  %v209_v43 = vpop.xlane.xlu0 %208 }
 0x19e   :  { %v219_v44 = vmul.f32 0.03125, %v215_v42  ;;  %v217_v45 = vmul.f32 0.03125, %v209_v43  ;;  %v224_v46 = vmul.f32 %v220_v41, %v220_v41  ;;  %v226_v50 = vmul.f32 %v222_v40, %v222_v40 }
 0x1a0   :  { %v223_v47 = vsub.f32 %v200_v30, %v219_v44  ;;  %v221_v48 = vsub.f32 %v192_v28, %v217_v45  ;;  %v228_v49 = vsel %vm203_vm2, %v224_v46, 0.0  ;;  %v234_v52 = vsel %vm203_vm2, %v226_v50, 0.0 }
 0x1a1   :  { %229 = vadd.xlane.f32.xlu0 %v228_v49 }
 0x1a2   :  { %v225_v51 = vmul.f32 %v221_v48, %v221_v48  ;;  %v227_v54 = vmul.f32 %v223_v47, %v223_v47 }
 0x1a4   :  { %v231_v53 = vsel %vm203_vm2, %v225_v51, 0.0  ;;  %v237_v55 = vsel %vm203_vm2, %v227_v54, 0.0 }
 0x1a5   :  { %235 = vadd.xlane.f32.xlu0 %v234_v52  ;;  %232 = vadd.xlane.f32.xlu1 %v231_v53 }
 0x1a9   :  { %238 = vadd.xlane.f32.xlu1 %v237_v55 }
 0x22e   :  { %v230_v56 = vpop.xlane.xlu0 %229 }
 0x22f   :  { %v240_v57 = vmul.f32 0.03125, %v230_v56 }
 0x231   :  { %v244_v58 = vadd.f32 1e-05, %v240_v57 }
 0x232   :  { %v233_v59 = vpop.xlane.xlu1 %232  ;;  %v236_v60 = vpop.xlane.xlu0 %235 }
 0x233   :  { %390 = vrsqrt.f32 %v244_v58  ;;  %v241_v61 = vmul.f32 0.03125, %v233_v59  ;;  %v242_v62 = vmul.f32 0.03125, %v236_v60 }
 0x235   :  { %v245_v63 = vadd.f32 1e-05, %v241_v61  ;;  %v246_v0 = vadd.f32 1e-05, %v242_v62 }
 0x236   :  { %v239_v1 = vpop.xlane.xlu1 %238 }
 0x237   :  { %392 = vrsqrt.f32 %v245_v63  ;;  %v243_v2 = vmul.f32 0.03125, %v239_v1 }
 0x238   :  { %394 = vrsqrt.f32 %v246_v0 }
 0x239   :  { %v247_v3 = vadd.f32 1e-05, %v243_v2 }
 0x23b   :  { %396 = vrsqrt.f32 %v247_v3 }
 0x23d   :  { %v391_v4 = vpop.eup %390 }
 0x23e   :  { %v252_v6 = vmul.f32 %v391_v4, %v220_v41 }
 0x240   :  { %v261_v8 = vmul.f32 %v331_v5, %v252_v6 }
 0x241   :  { %v393_v9 = vpop.eup %392 }
 0x242   :  { %v395_v10 = vpop.eup %394  ;;  %v270_v11 = vadd.f32 %v332_v7, %v261_v8  ;;  %v253_v12 = vmul.f32 %v393_v9, %v221_v48 }
 0x243   :  { %v254_v13 = vmul.f32 %v395_v10, %v222_v40 }
 0x244   :  { %v337_v14 = vpack.c.bf16 %v270_v11, %v270_v11  ;;  %v262_v15 = vmul.f32 %v331_v5, %v253_v12 }
 0x245   :  { %v397_v16 = vpop.eup %396  ;;  %v263_v17 = vmul.f32 %v331_v5, %v254_v13 }
 0x246   :  { %v271_v18 = vadd.f32 %v332_v7, %v262_v15  ;;  %v255_v19 = vmul.f32 %v397_v16, %v223_v47  ;;  %291 = vst.msk [vmem:[#allocation2] sm:$0xf] %vm290_vm3, %v337_v14 }
 0x247   :  { %v272_v20 = vadd.f32 %v332_v7, %v263_v17 }
 0x248   :  { %v338_v21 = vpack.c.bf16 %v271_v18, %v271_v18  ;;  %v264_v22 = vmul.f32 %v331_v5, %v255_v19 }
 0x249   :  { %v339_v23 = vpack.c.bf16 %v272_v20, %v272_v20 }
 0x24a   :  { %v273_v24 = vadd.f32 %v332_v7, %v264_v22  ;;  %292 = vst.msk [vmem:[#allocation2 + $0x4] sm:$0xf] %vm290_vm3, %v338_v21 }
 0x24b   :  { %293 = vst.msk [vmem:[#allocation2 + $0x8] sm:$0xf] %vm290_vm3, %v339_v23 }
 0x24c   :  { %v340_v25 = vpack.c.bf16 %v273_v24, %v273_v24 }
 0x24e   :  { %294 = vst.msk [vmem:[#allocation2 + $0xc] sm:$0xf] %vm290_vm3, %v340_v25 }
 0x24f   :  { %409 = shalt.err (!%p406_p4)
}
 0x250   :  { %s410_s27 = scalar_lea.hbm %s559_s3, 256 }
 0x251   :  { %p411_p5 = scmp.ne.s32.totalorder %s559_s3, %s410_s27  ;;  %p414_p6 = scmp.lt.u32.totalorder %s410_s27, %s559_s3 }
 0x253   :  { %p416_p7 = pnand %p414_p6, %p411_p5 }
 0x255   :  { %419 = shalt.err (!%p416_p7)
}
 0x256   :  { %s424_s5 = smov 64   ;;  %s425_s6 = smov 4  }
 0x257   :  { %306 = dma.vmem_to_hbm [thread:$0]  %s301_s23, 256, %s559_s3, [#allocation3], %s424_s5, %s424_s5, %s425_s6  }
 0x258   :  { %420 = dma.done.wait [#allocation3], 256  }
 0x259   :  { %421 = vsyncadd [#allocation3], 4294967040 }
 0x25a   :  { %310 = vsyncpa [#allocation3], 1 }

</bundles_post_ra>
